<compile_context>
chip_gen: v6e
topology: v6e:2x2x1
jax: 0.10.0
libtpu: 0.0.40
codegen_flags: <defaults>
</compile_context>

<pallas_src>
import functools

import jax
import jax.numpy as jnp
from jax.experimental import pallas as pl
from jax.experimental.pallas import tpu as pltpu


# ----------------------------------------------------------------------------
# Shared body: apply the same Linear twice with a pre-transposed weight.
# ----------------------------------------------------------------------------
def _apply_linear_twice(x, w_t, b):
    h = jnp.dot(x, w_t, preferred_element_type=jnp.float32) + b
    # TODO(synk): train-mode dropout (p=0.35) would use pltpu.prng_seed +
    # pltpu.prng_random_bits here; inference-mode dropout is the identity.
    y_pred = jnp.dot(h, w_t, preferred_element_type=jnp.float32) + b
    return y_pred


# ----------------------------------------------------------------------------
# Kernel 1: inference branch — y_pred only. Gridded over batch blocks,
# weight/bias resident, batch axis "parallel".
# ----------------------------------------------------------------------------
def _forward_kernel(x_ref, w_ref, b_ref, out_ref):
    x = x_ref[...].astype(jnp.float32)
    w_t = w_ref[...].astype(jnp.float32).T          # single transpose per step
    b = b_ref[...].astype(jnp.float32)              # (1, D) broadcasts over rows
    out_ref[...] = _apply_linear_twice(x, w_t, b).astype(out_ref.dtype)


# ----------------------------------------------------------------------------
# Kernel 2 (fused): forward + y_pred output + mean cross-entropy, one launch.
#   CE_i = logsumexp(logits_i) - logits_i[y_i];   loss = (1/B) * sum_i CE_i
# ----------------------------------------------------------------------------
def _loss_kernel(x_ref, w_ref, b_ref, y_ref, ypred_ref, loss_ref, acc_ref, *,
                 inv_b):
    i = pl.program_id(0)

    @pl.when(i == 0)
    def _():
        acc_ref[0] = jnp.float32(0.0)

    tb, d = x_ref.shape
    x = x_ref[...].astype(jnp.float32)
    w_t = w_ref[...].astype(jnp.float32).T
    b = b_ref[...].astype(jnp.float32)

    logits = _apply_linear_twice(x, w_t, b)                          # (tb, d)
    ypred_ref[...] = logits.astype(ypred_ref.dtype)

    # Stable logsumexp.
    m = jnp.max(logits, axis=-1, keepdims=True)                      # (tb, 1)
    lse = m + jnp.log(jnp.sum(jnp.exp(logits - m), axis=-1, keepdims=True))

    # Label pick via lane-iota compare against the (tb, 1) int32 label column.
    col = jax.lax.broadcasted_iota(jnp.int32, (tb, d), 1)
    labels = y_ref[...]                                              # (tb, 1)
    picked = jnp.sum(jnp.where(col == labels, logits, 0.0),
                     axis=-1, keepdims=True)                         # (tb, 1)

    acc_ref[0] += jnp.sum(lse - picked)                              # block sum

    @pl.when(i == pl.num_programs(0) - 1)
    def _():
        loss_ref[0] = acc_ref[0] * inv_b          # compile-time 1/B mean


# ----------------------------------------------------------------------------
# Wrappers
# ----------------------------------------------------------------------------
def _batch_block(batch, block_b):
    """Pick a sublane-aligned batch block (falls back to the whole batch)."""
    if block_b < batch and batch % block_b == 0 and block_b % 8 == 0:
        return block_b
    return batch


def torch_model_forward(x, weight, bias, *, block_b=8):
    """y_pred branch (y is None). x: (B, D) f32, weight: (D, D) (out, in)."""
    B, D = x.shape
    tb = _batch_block(B, block_b)
    itemsize = jnp.dtype(jnp.float32).itemsize
    cost = pl.CostEstimate(
        flops=4 * B * D * D,
        transcendentals=0,
        bytes_accessed=(2 * B * D + D * D + D) * itemsize,
    )
    return pl.pallas_call(
        _forward_kernel,
        out_shape=jax.ShapeDtypeStruct((B, D), x.dtype),
        grid=(B // tb,),
        in_specs=[
            pl.BlockSpec((tb, D), lambda i: (i, 0)),   # x batch block
            pl.BlockSpec((D, D), lambda i: (0, 0)),    # resident weight
            pl.BlockSpec((1, D), lambda i: (0, 0)),    # resident bias
        ],
        out_specs=pl.BlockSpec((tb, D), lambda i: (i, 0)),
        compiler_params=pltpu.CompilerParams(dimension_semantics=("parallel",)),
        cost_estimate=cost,
    )(x, weight, bias.reshape(1, D))


def torch_model_loss(x, y, weight, bias, *, block_b=8):
    """Loss branch (y given as int class indices, shape (B,)).

    Single fused launch; returns (loss_scalar, y_pred) so callers needing both
    do not pay a second kernel launch.
    """
    B, D = x.shape
    tb = _batch_block(B, block_b)
    itemsize = jnp.dtype(jnp.float32).itemsize
    cost = pl.CostEstimate(
        flops=4 * B * D * D + 8 * B * D,
        transcendentals=B * D + B,        # exp per logit + log per row
        bytes_accessed=(2 * B * D + D * D + D + B) * itemsize + itemsize,
    )
    y_pred, loss = pl.pallas_call(
        functools.partial(_loss_kernel, inv_b=1.0 / B),
        out_shape=(
            jax.ShapeDtypeStruct((B, D), x.dtype),      # y_pred
            jax.ShapeDtypeStruct((1,), jnp.float32),    # scalar loss
        ),
        grid=(B // tb,),
        in_specs=[
            pl.BlockSpec((tb, D), lambda i: (i, 0)),    # x batch block
            pl.BlockSpec((D, D), lambda i: (0, 0)),     # resident weight
            pl.BlockSpec((1, D), lambda i: (0, 0)),     # resident bias
            pl.BlockSpec((tb, 1), lambda i: (i, 0)),    # labels column
        ],
        out_specs=(
            pl.BlockSpec((tb, D), lambda i: (i, 0)),
            pl.BlockSpec((1,), lambda i: (0,),
                         memory_space=pltpu.MemorySpace.SMEM),
        ),
        scratch_shapes=[pltpu.SMEM((1,), jnp.float32)],  # CE accumulator
        # Accumulator is resident across the batch axis -> "arbitrary".
        compiler_params=pltpu.CompilerParams(dimension_semantics=("arbitrary",)),
        cost_estimate=cost,
    )(x, weight, bias.reshape(1, D), y.reshape(B, 1).astype(jnp.int32))
    return loss[0], y_pred


# ----------------------------------------------------------------------------
if __name__ == "__main__":
    B = 32           # batch (gridded as 4 blocks of 8 rows)
    D = 32           # input_size == hidden == num classes

    key = jax.random.PRNGKey(0)
    kx, ky, kw, kb = jax.random.split(key, 4)

    # Deterministic parameter init (shapes match nn.Linear(D, D)).
    bound = 1.0 / jnp.sqrt(jnp.float32(D))
    weight = jax.random.uniform(kw, (D, D), jnp.float32, -bound, bound)
    bias = jax.random.uniform(kb, (D,), jnp.float32, -bound, bound)

    x = jax.random.normal(kx, (B, D), jnp.float32)
    y = jax.random.randint(ky, (B,), 0, D, jnp.int32)

    # Inference branch (y is None).
    y_pred = jax.block_until_ready(torch_model_forward(x, weight, bias))

    # Training-loss branch (y given) — one fused kernel, also returns y_pred.
    loss, y_pred_fused = torch_model_loss(x, y, weight, bias)
    loss = jax.block_until_ready(loss)
    y_pred_fused = jax.block_until_ready(y_pred_fused)

    # Sanity check against a plain-JAX reference (eval-mode dropout = identity).
    h_ref = x @ weight.T + bias
    yp_ref = h_ref @ weight.T + bias
    lse = jax.scipy.special.logsumexp(yp_ref, axis=-1)
    loss_ref = jnp.mean(lse - yp_ref[jnp.arange(B), y])
    assert jnp.allclose(y_pred, yp_ref, atol=1e-4, rtol=1e-4)
    assert jnp.allclose(y_pred_fused, yp_ref, atol=1e-4, rtol=1e-4)
    assert jnp.allclose(loss, loss_ref, atol=1e-4, rtol=1e-4)

    print("KERNEL_OK")
</pallas_src>

<mosaic_0001>
module attributes {stable_mosaic.version = 11 : i64} {
  func.func @_forward_kernel(%arg0: i32, %arg1: memref<8x32xf32, #tpu.memory_space<vmem>>, %arg2: memref<32x32xf32, #tpu.memory_space<vmem>>, %arg3: memref<1x32xf32, #tpu.memory_space<vmem>>, %arg4: memref<8x32xf32, #tpu.memory_space<vmem>>) attributes {dimension_semantics = [#tpu.dimension_semantics<parallel>], iteration_bounds = array<i64: 4>, scalar_prefetch = 0 : i64, scratch_operands = 0 : i64, tpu.core_type = #tpu.core_type<tc>, window_params = [{transform_indices = @transform_0, window_bounds = array<i64: 8, 32>}, {pipeline_mode = #tpu.pipeline_mode<synchronous>, transform_indices = @transform_1, window_bounds = array<i64: 32, 32>}, {pipeline_mode = #tpu.pipeline_mode<synchronous>, transform_indices = @transform_2, window_bounds = array<i64: 1, 32>}, {transform_indices = @transform_3, window_bounds = array<i64: 8, 32>}]} {
    %c0 = arith.constant 0 : index
    %c0_0 = arith.constant 0 : index
    %0 = vector.load %arg1[%c0, %c0_0] : memref<8x32xf32, #tpu.memory_space<vmem>>, vector<8x32xf32>
    %c0_1 = arith.constant 0 : index
    %c0_2 = arith.constant 0 : index
    %1 = vector.load %arg2[%c0_1, %c0_2] : memref<32x32xf32, #tpu.memory_space<vmem>>, vector<32x32xf32>
    %2 = tpu.transpose %1, [1, 0] : vector<32x32xf32> -> vector<32x32xf32>
    %c0_3 = arith.constant 0 : index
    %c0_4 = arith.constant 0 : index
    %3 = vector.load %arg3[%c0_3, %c0_4] : memref<1x32xf32, #tpu.memory_space<vmem>>, vector<1x32xf32>
    %cst = arith.constant dense<0.000000e+00> : vector<8x32xf32>
    %4 = tpu.matmul %0, %2, %cst {dimension_numbers = #tpu.dot_dimension_numbers<[1], [0], [0], [1], [0, 0, 1, 1], [], []>} : vector<8x32xf32>, vector<32x32xf32>, vector<8x32xf32> -> vector<8x32xf32>
    %5 = vector.broadcast %3 : vector<1x32xf32> to vector<8x32xf32>
    %6 = arith.addf %4, %5 : vector<8x32xf32>
    %cst_5 = arith.constant dense<0.000000e+00> : vector<8x32xf32>
    %7 = tpu.matmul %6, %2, %cst_5 {dimension_numbers = #tpu.dot_dimension_numbers<[1], [0], [0], [1], [0, 0, 1, 1], [], []>} : vector<8x32xf32>, vector<32x32xf32>, vector<8x32xf32> -> vector<8x32xf32>
    %8 = vector.broadcast %3 : vector<1x32xf32> to vector<8x32xf32>
    %9 = arith.addf %7, %8 : vector<8x32xf32>
    %c0_6 = arith.constant 0 : index
    %c0_7 = arith.constant 0 : index
    %10 = vector.load %arg4[%c0_6, %c0_7] : memref<8x32xf32, #tpu.memory_space<vmem>>, vector<8x32xf32>
    tpu.vector_store %arg4[%c0_6, %c0_7], %9 {strides = array<i32>} : memref<8x32xf32, #tpu.memory_space<vmem>>, vector<8x32xf32>,
    return
  }
  func.func @transform_0(%arg0: i32) -> (i32, i32) {
    %c0_i32 = arith.constant 0 : i32
    %c0_i32_0 = arith.constant 0 : i32
    return %arg0, %c0_i32 : i32, i32
  }
  func.func @transform_1(%arg0: i32) -> (i32, i32) {
    %c0_i32 = arith.constant 0 : i32
    %c0_i32_0 = arith.constant 0 : i32
    %c0_i32_1 = arith.constant 0 : i32
    return %c0_i32, %c0_i32_0 : i32, i32
  }
  func.func @transform_2(%arg0: i32) -> (i32, i32) {
    %c0_i32 = arith.constant 0 : i32
    %c0_i32_0 = arith.constant 0 : i32
    %c0_i32_1 = arith.constant 0 : i32
    return %c0_i32, %c0_i32_0 : i32, i32
  }
  func.func @transform_3(%arg0: i32) -> (i32, i32) {
    %c0_i32 = arith.constant 0 : i32
    %c0_i32_0 = arith.constant 0 : i32
    return %arg0, %c0_i32 : i32, i32
  }
}

</mosaic_0001>

<bundles_post_ra>
// kernel: tpu_custom_call.1
= control target key start
LH: loop header
LB: loop body
LE: loop exit
PB: predicated region body
PF: predicated region fallthrough
CT: control target
= control target key end

     0   :  { %8 = vsyncpa [#allocation3], 0  ;;  %s912_s0 = inlined_call_operand.hbm [shape: f32[32,32], index: 0, kind: input, shape index: {}]   ;;  %s913_s1 = inlined_call_operand.hbm [shape: f32[32,32], index: 1, kind: input, shape index: {}]   ;;  %s914_s2 = inlined_call_operand.vmem [shape: f32[1,32], index: 2, kind: input, shape index: {}]   ;;  %s915_s3 = inlined_call_operand.hbm [shape: f32[32,32], index: 3, kind: output, shape index: {}]  }
   0x1   :  { %10 = vsyncpa [#allocation3 + $0x1], 0 }
   0x2   :  { %11 = vsyncpa [#allocation6], 0 }
   0x3   :  { %12 = vsyncpa [#allocation4], 0 }
   0x4   :  { %14 = vsyncpa [#allocation4 + $0x1], 0  ;;  %s736_s12 = smov 0   ;;  %s738_s13 = smov 0  }
   0x5   :  { %s740_s14 = smov 0   ;;  %s742_s15 = smov 0  }
   0x6 LB: > { %s757_s16 = sadd.s32 4294967295, %s707_s15   ;;  %s467_s17 = sadd.s32 4294967294, %s707_s15   ;;  %s707_s15 = sphi %s742_s15, %s936_s15   ;;  %s703_s14 = sphi %s740_s14, %s935_s14   ;;  %s699_s13 = sphi %s738_s13, %s934_s13   ;;  %s695_s12 = sphi %s736_s12, %s933_s12  }
   0x7   : > { %p40_p0 = scmp.ne.s32.totalorder %s699_s13, %s695_s12  ;;  %p916_p1 = scmp.eq.s32.totalorder %s757_s16, 0 }
   0x8   : > { %p112_p3 = scmp.eq.s32.totalorder %s467_s17, 3  ;;  %p468_p5 = scmp.ge.s32.totalorder %s707_s15, 1 }
   0x9   : > { %p766_p4 = por %p916_p1, %p40_p0  ;;  %p119_p7 = scmp.lt.s32.totalorder %s707_s15, 5 }
   0xa   : > { %p771_p6 = por %p112_p3, %p40_p0  ;;  %s709_s21 = smov [#allocation5]  }
   0xb   : > { %s920_s18 = scalar_select %p766_p4, 1, 0 }
   0xc   : > { %s921_s19 = scalar_select %p771_p6, 1, 0 }
   0xd   : > { %p776_p8 = pnand %p468_p5, %p119_p7  ;;  %s131_s22 = sshll.u32 %s709_s21, 4  ;;  %s132_s22 = int_to_ptr.vmem [resolvable:$true] %s131_s22 }
   0xe   : > { %s789_s24 = sadd.s32 1, %s707_s15   ;;  %s27_s25 = sadd.s32 1, %s703_s14 }
   0xf   : > { %s922_s20 = scalar_select %p776_p8, 1, 0 }
  0x10   : > { %p532_p9 = pneg %p776_p8  ;;  %s24_s26 = ssub.s32 %s707_s15, %s789_s24 }
  0x11   : > { %s596_s27 = scalar_lea.vmem %s132_s22, 512  ;;  %p604_p3 = scmp.lt.s32.totalorder %s132_s22, %s132_s22 }
  0x12   : > { %p784_p10 = pnand %p532_p9, %p916_p1  ;;  %p597_p12 = scmp.ne.s32.totalorder %s132_s22, %s596_s27 }
  0x13   : > { %p605_p5 = scmp.lt.s32.totalorder %s596_s27, %s596_s27 }
  0x14   : > { %p587_p11 = pneg %p784_p10 }
  0x15   : > { %p606_p7 = por %p605_p5, %p604_p3 }
  0x16   : > { %p599_p13 = pnand %p597_p12, %p587_p11 }
  0x18   : > { %p600_p0 = pneg %p599_p13 }
  0x1a   : > { %p607_p2 = pnand %p606_p7, %p600_p0 }
  0x1c   : > { %610 = shalt.err (!%p607_p2)
}
  0x1d   : > { %s710_s28 = smov 128   ;;  %s711_s29 = smov 8  }
  0x1e   : > { %535 = dma.hbm_to_vmem [thread:$0]  (!%p784_p10), %s913_s1, 512, %s132_s22, [#allocation6], %s710_s28, %s710_s28, %s711_s29  }
  0x1f   : > { %p25_p9 = scmp.eq.s32.totalorder %s24_s26, 0  ;;  %p34_p11 = scmp.ne.s32.totalorder %s703_s14, %s699_s13 }
  0x20   : > { %p35_p12 = scmp.eq.s32.totalorder %s707_s15, 0  ;;  %p545_p2 = scmp.lt.s32.totalorder %s707_s15, 4 }
  0x21   : > { %s806_s5 = scalar_select %p25_p9, %s703_s14, %s27_s25  }
  0x22   : > { %p36_p13 = por %p35_p12, %p34_p11  ;;  %p924_p0 = scmp.eq.s32.totalorder %s757_s16, 3 }
  0x23   : > { %s148_s7 = sand.u32 1, %s703_s14   ;;  %s472_s8 = sshll.u32 %s707_s15, 7 }
  0x24   : > { %p810_p3 = por %p924_p0, %p34_p11  ;;  %s471_s9 = sshll.u32 %s148_s7, 3 }
  0x25   : > { %s819_s17 = scalar_lea.hbm %s912_s0, %s472_s8  ;;  %s152_s21 = scalar_lea.vmem [#allocation2], %s471_s9 }
  0x26   : > { %s925_s6 = scalar_select %p810_p3, 1, 0 }
  0x27   : > { %s159_s22 = sshll.u32 %s152_s21, 4  ;;  %p821_p10 = pnand %p545_p2, %p36_p13  ;;  %s160_s22 = int_to_ptr.vmem [resolvable:$true] %s159_s22 }
  0x28   : > { %s149_s25 = scalar_lea.sflag [#allocation3], %s148_s7  ;;  %s611_s26 = scalar_lea.hbm %s819_s17, 128 }
  0x29   : > { %p612_p5 = scmp.ne.s32.totalorder %s819_s17, %s611_s26  ;;  %p613_p7 = pneg %p821_p10 }
  0x2a   : > { %s616_s29 = scalar_lea.hbm %s912_s0, 512  ;;  %p617_p12 = scmp.lt.s32.totalorder %s819_s17, %s912_s0 }
  0x2b   : > { %p614_p9 = pnand %p613_p7, %p612_p5  ;;  %p618_p2 = scmp.lt.s32.totalorder %s616_s29, %s611_s26 }
  0x2d   : > { %p615_p11 = pneg %p614_p9  ;;  %p619_p13 = por %p618_p2, %p617_p12 }
  0x2f   : > { %p620_p0 = pnand %p619_p13, %p615_p11 }
  0x31   : > { %623 = shalt.err (!%p620_p0)
}
  0x32   : > { %s624_s8 = scalar_lea.vmem %s160_s22, 128  ;;  %s712_s7 = smov [#allocation2]  }
  0x33   : > { %p625_p1 = scmp.ne.s32.totalorder %s160_s22, %s624_s8  ;;  %s629_s9 = sshll.u32 %s712_s7, 4  ;;  %s630_s9 = int_to_ptr.vmem [resolvable:$false] %s629_s9 }
  0x34   : > { %s631_s10 = scalar_lea.vmem %s630_s9, 256  ;;  %p632_p5 = scmp.lt.s32.totalorder %s160_s22, %s630_s9 }
  0x35   : > { %p627_p6 = pnand %p625_p1, %p613_p7  ;;  %p633_p9 = scmp.lt.s32.totalorder %s631_s10, %s624_s8 }
  0x37   : > { %p628_p3 = pneg %p627_p6  ;;  %p634_p4 = por %p633_p9, %p632_p5 }
  0x39   : > { %p635_p8 = pnand %p634_p4, %p628_p3 }
  0x3b   : > { %638 = shalt.err (!%p635_p8)
}
  0x3c   : > { %539 = dma.hbm_to_vmem [thread:$0]  (!%p821_p10), %s819_s17, 128, %s160_s22, %s149_s25  }
  0x3d   : > { %p927_p11 = scmp.ne.s32.totalorder %s922_s20, 0 }
  0x3e   : > { %s842_s11 = sand.u32 (!%p927_p11), 1, %s699_s13   ;;  %p928_p1 = scmp.ne.s32.totalorder (!%p927_p11), %s920_s18, 0 }
  0x3f   : > { %168 = sbr.rel (%p927_p11) target bundleno = 493 (0x1ed), region = 32  ;;  %s474_s21 = sshll.u32 (!%p927_p11), %s842_s11, 3 }
  0x40   : > { %s171_s26 = scalar_lea.sflag (!%p927_p11), [#allocation3], %s842_s11  ;;  %s174_s27 = scalar_lea.vmem (!%p927_p11), [#allocation2], %s474_s21 }
  0x44   : > { %682 = dma.done.wait (%p928_p1), %s171_s26, 128  }
  0x45   : > { %684 = vsyncadd (%p928_p1), %s171_s26, 4294967168  ;;  %p929_p4 = scmp.eq.s32.totalorder %s757_s16, 0 }
  0x47   : > { %686 = dma.done.wait (%p929_p4), [#allocation6], 512   ;;  %p930_p6 = pmov %p929_p4 }
  0x48   : > { %v713_v0 = vmov 0.0   ;;  %vm714_vm0 = vmmov 0   ;;  %vm213_vm1 = vcmask 261120   ;;  %v205_v1 = vld [vmem:[#allocation5 + $0x18] sm:$0xff]  ;;  %v204_v2 = vld [vmem:[#allocation5 + $0x10] sm:$0xff]  ;;  %v203_v3 = vld [vmem:[#allocation5 + $0x8] sm:$0xff] }
  0x49   : > { %688 = vsyncadd (%p930_p6), [#allocation6], 4294966784  ;;  %502 = vmatprep.subr.mxu0 %v713_v0  ;;  %510 = vmatprep.mubr.msk.f32.mxu0 %vm714_vm0, %v713_v0  ;;  %v202_v4 = vld [vmem:[#allocation5] sm:$0xff]  ;;  %v201_v5 = vld [vmem:[%s174_s27] sm:$0xff]  ;;  %s489_s17 = sshll.u32 %s757_s16, 7  ;;  %s200_s22 = scalar_lea.vmem [#allocation7], %s474_s21 }
  0x4a   : > { %513 = vmatprep.subr.mxu1 %v713_v0  ;;  %521 = vmatprep.mubr.msk.f32.mxu1 %vm714_vm0, %v713_v0  ;;  %v477_v6 = vld [vmem:[%s914_s2] ss:$0 sm:$0xff]  ;;  %s387_s23 = sshll.u32 %s200_s22, 4  ;;  %s875_s29 = scalar_lea.hbm %s915_s3, %s489_s17  ;;  %s388_s23 = int_to_ptr.vmem [resolvable:$true] %s387_s23 }
  0x4b   : > { %503 = vmatpush3.xpose.msk.msra.mxu0 %vm213_vm1, %v205_v1  ;;  %514 = vmatpush3.xpose.msk.msra.mxu1 %vm213_vm1, %v205_v1  ;;  %s374_s30 = scalar_lea.sflag [#allocation4], %s842_s11  ;;  %s639_s4 = scalar_lea.vmem %s388_s23, 128 }
  0x4c   : > { %504 = vmatprep.subr.mxu0 %v713_v0  ;;  %515 = vmatprep.subr.mxu1 %v713_v0  ;;  %p640_p8 = scmp.ne.s32.totalorder %s388_s23, %s639_s4  ;;  %p931_p3 = scmp.ne.s32.totalorder %s925_s6, 0 }
  0x4d   : > { %s715_s16 = smov [#allocation7]  }
  0x4e   : > { %p641_p10 = pnand %p640_p8, %p931_p3  ;;  %s643_s8 = sshll.u32 %s715_s16, 4  ;;  %s644_s8 = int_to_ptr.vmem [resolvable:$false] %s643_s8 }
  0x4f   : > { %505 = vmatpush3.xpose.msk.msra.mxu0 %vm213_vm1, %v204_v2  ;;  %516 = vmatpush3.xpose.msk.msra.mxu1 %vm213_vm1, %v204_v2  ;;  %s645_s7 = scalar_lea.vmem %s644_s8, 256  ;;  %p646_p12 = scmp.lt.s32.totalorder %s388_s23, %s644_s8 }
  0x50   : > { %506 = vmatprep.subr.mxu0 %v713_v0  ;;  %517 = vmatprep.subr.mxu1 %v713_v0  ;;  %p642_p7 = pneg %p641_p10  ;;  %p647_p2 = scmp.lt.s32.totalorder %s645_s7, %s639_s4 }
  0x52   : > { %p648_p13 = por %p647_p2, %p646_p12 }
  0x53   : > { %507 = vmatpush3.xpose.msk.msra.mxu0 %vm213_vm1, %v203_v3  ;;  %518 = vmatpush3.xpose.msk.msra.mxu1 %vm213_vm1, %v203_v3 }
  0x54   : > { %508 = vmatprep.subr.mxu0 %v713_v0  ;;  %519 = vmatprep.subr.mxu1 %v713_v0  ;;  %p649_p0 = pnand %p648_p13, %p642_p7 }
  0x57   : > { %509 = vmatpush3.xpose.msk.msra.mxu0 %vm213_vm1, %v202_v4  ;;  %520 = vmatpush3.xpose.msk.msra.mxu1 %vm213_vm1, %v202_v4 }
  0x5a   : > { %511 = vmatmul.mubr.msk.f32.vlgmr.msra.gmra.mxu0 %vm213_vm1, %v201_v5 }
 0x11a   : > { %v295_v7 = vpop.f32.mrf.mxu0 }
 0x11b   : > { %v296_v8 = vadd.f32 %v477_v6, %v295_v7 }
 0x11c   : > { %v512_v9 = vpop.f32.mrf.mxu0 }
 0x11d   : > { %522 = vmatmul.mubr.msk.f32.vlgmr.msra.gmra.mxu1 %vm213_vm1, %v296_v8 }
 0x1dd   : > { %v368_v10 = vpop.f32.mrf.mxu1 }
 0x1de   : > { %v369_v11 = vadd.f32 %v477_v6, %v368_v10 }
 0x1df   : > { %v523_v12 = vpop.f32.mrf.mxu1 }
 0x1e0   : > { %372 = vst.msk [vmem:[%s200_s22] sm:$0xff] %vm213_vm1, %v369_v11 }
 0x1e1   : > { %652 = shalt.err (!%p649_p0)
}
 0x1e2   : > { %s653_s9 = scalar_lea.hbm %s875_s29, 128  ;;  %s657_s21 = scalar_lea.hbm %s915_s3, 512 }
 0x1e3   : > { %p654_p5 = scmp.ne.s32.totalorder %s875_s29, %s653_s9  ;;  %p658_p1 = scmp.lt.s32.totalorder %s875_s29, %s915_s3 }
 0x1e4   : > { %p659_p4 = scmp.lt.s32.totalorder %s657_s21, %s653_s9 }
 0x1e5   : > { %p655_p9 = pnand %p654_p5, %p931_p3 }
 0x1e6   : > { %p660_p6 = por %p659_p4, %p658_p1 }
 0x1e7   : > { %p656_p11 = pneg %p655_p9 }
 0x1e9   : > { %p661_p8 = pnand %p660_p6, %p656_p11 }
 0x1eb   : > { %664 = shalt.err (!%p661_p8)
}
 0x1ec   : > { %530 = dma.vmem_to_hbm [thread:$0]  (%p931_p3), %s388_s23, 128, %s875_s29, %s374_s30  }
 0x1ed PF: > { %p547_p10 = scmp.ge.s32.totalorder %s707_s15, 2  ;;  %s399_s18 = sand.u32 1, %s695_s12  }
 0x1ee   : > { %p932_p7 = scmp.ne.s32.totalorder %s921_s19, 0  ;;  %s400_s20 = scalar_lea.sflag [#allocation4], %s399_s18 }
 0x1f0   : > { %p541_p12 = pnand %p547_p10, %p932_p7 }
 0x1f2   : > { %p542_p2 = pneg %p541_p12 }
 0x1f4   : > { %690 = dma.done.wait (%p542_p2), %s400_s20, 128  }
 0x1f5   : > { %692 = vsyncadd (%p542_p2), %s400_s20, 4294967168  ;;  %p17_p13 = scmp.ge.s32.totalorder %s789_s24, 6   ;;  %s933_s12 = smov %s699_s13 }
 0x1f6   : > { %s934_s13 = smov %s703_s14  ;;  %s935_s14 = smov %s806_s5 }
 0x1f7   : > { %s936_s15 = smov %s789_s24  ;;  %19 = sbr.rel (!%p17_p13) target bundleno = 6 (0x6), region = 81 }
 0x1fc   :  { %405 = vsyncpa [#allocation3], 1 }
 0x1fd   :  { %407 = vsyncpa [#allocation3 + $0x1], 1 }
 0x1fe   :  { %408 = vsyncpa [#allocation6], 1 }
 0x1ff   :  { %409 = vsyncpa [#allocation4], 1 }
 0x200   :  { %411 = vsyncpa [#allocation4 + $0x1], 1 }

</bundles_post_ra>
